<compile_context>
chip_gen: v7x
topology: tpu7x:2x2x1
jax: 0.10.0
libtpu: 0.0.40
codegen_flags: <defaults>
</compile_context>

<pallas_src>
import functools

import jax
import jax.numpy as jnp
from jax.experimental import pallas as pl
from jax.experimental.pallas import tpu as pltpu


# ----------------------------- small helpers --------------------------------

def _round_up(x, m):
    return ((x + m - 1) // m) * m


def _pad_dim(n):
    """Pad a dimension to a lane/sublane friendly multiple (>=128)."""
    if n >= 2048:
        return _round_up(n, 512)
    if n >= 512:
        return _round_up(n, 256)
    return _round_up(n, 128)


def _pick_tile(dim_pad, candidates=(512, 256, 128)):
    for c in candidates:
        if dim_pad % c == 0:
            return c
    return 128  # unreachable: dim_pad is always a multiple of 128


def _glorot(key, shape):
    fan_in, fan_out = shape[-2], shape[-1]
    limit = (6.0 / (fan_in + fan_out)) ** 0.5
    return jax.random.uniform(key, shape, jnp.float32, -limit, limit)


def _apply_activation(x, activation):
    if activation is None or activation == "None":
        return x
    if activation == "relu":
        return jnp.maximum(x, 0.0)
    raise ValueError(f"unsupported activation: {activation}")


# ------------------------- Pallas kernel (hot path) --------------------------

def _arma_agg_kernel(a_ref, h_ref, r_ref, o_ref, acc_ref, *, apply_relu):
    """Tiled O = maybe_relu(A_hat @ H + R) with f32 accumulation over the k axis."""
    @pl.when(pl.program_id(2) == 0)
    def _init():
        acc_ref[...] = jnp.zeros_like(acc_ref)

    acc_ref[...] += jnp.dot(a_ref[...], h_ref[...],
                            preferred_element_type=jnp.float32)

    @pl.when(pl.program_id(2) == pl.num_programs(2) - 1)
    def _finalize():
        out = acc_ref[...] + r_ref[...]
        if apply_relu:
            out = jnp.maximum(out, 0.0)
        o_ref[...] = out.astype(o_ref.dtype)


def arma_aggregate_pallas(a_hat_pad_bf16, h, r, apply_relu):
    """out = maybe_relu(A_hat @ H + R).

    a_hat_pad_bf16: [N_pad, N_pad] bf16 (already zero-padded)
    h:              [N, C] f32 (projected features, K stacks packed along C)
    r:              [N, C] f32 (root skip + bias term)
    returns         [N, C] f32
    """
    n, c = h.shape
    n_pad = a_hat_pad_bf16.shape[0]
    c_pad = _pad_dim(max(c, 1))

    # Lane-dense, (16,128)-aligned padded operands (bf16 stream for the matmul
    # operands, f32 for the epilogue add and the output).
    h_p = jnp.zeros((n_pad, c_pad), jnp.bfloat16).at[:n, :c].set(
        h.astype(jnp.bfloat16))
    r_p = jnp.zeros((n_pad, c_pad), jnp.float32).at[:n, :c].set(
        r.astype(jnp.float32))

    tm = _pick_tile(n_pad)
    tk = _pick_tile(n_pad)
    tn = _pick_tile(c_pad)
    grid = (n_pad // tm, c_pad // tn, n_pad // tk)

    kernel = functools.partial(_arma_agg_kernel, apply_relu=apply_relu)

    flops = 2 * n_pad * n_pad * c_pad
    bytes_accessed = (n_pad * n_pad * 2 * (c_pad // tn)   # A_hat bf16 stream
                      + n_pad * c_pad * 2 * (n_pad // tm)  # H bf16 stream
                      + n_pad * c_pad * 4                  # R f32
                      + n_pad * c_pad * 4)                 # out f32

    out = pl.pallas_call(
        kernel,
        out_shape=jax.ShapeDtypeStruct((n_pad, c_pad), jnp.float32),
        grid_spec=pltpu.PrefetchScalarGridSpec(
            num_scalar_prefetch=0,
            grid=grid,
            in_specs=[
                pl.BlockSpec((tm, tk), lambda i, j, k: (i, k)),  # A_hat tile
                pl.BlockSpec((tk, tn), lambda i, j, k: (k, j)),  # H tile
                pl.BlockSpec((tm, tn), lambda i, j, k: (i, j)),  # R tile (k-inv)
            ],
            out_specs=pl.BlockSpec((tm, tn), lambda i, j, k: (i, j)),
            scratch_shapes=[pltpu.VMEM((tm, tn), jnp.float32)],
        ),
        compiler_params=pltpu.CompilerParams(
            dimension_semantics=("parallel", "parallel", "arbitrary"),
            vmem_limit_bytes=48 * 1024 * 1024),
        cost_estimate=pl.CostEstimate(flops=flops, transcendentals=0,
                                      bytes_accessed=bytes_accessed),
    )(a_hat_pad_bf16, h_p, r_p)

    return out[:n, :c]


# ------------------------------ JAX glue -------------------------------------

def gcn_norm_dense(edge_index, edge_weight, num_nodes):
    """torch_geometric gcn_norm(add_self_loops=False), dense A_hat[dst, src]."""
    row, col = edge_index[0], edge_index[1]
    ew = edge_weight.astype(jnp.float32)
    deg = jnp.zeros((num_nodes,), jnp.float32).at[col].add(ew)
    deg_inv_sqrt = jnp.where(deg > 0, jax.lax.rsqrt(deg), 0.0)
    norm = deg_inv_sqrt[row] * ew * deg_inv_sqrt[col]
    a_hat = jnp.zeros((num_nodes, num_nodes), jnp.float32).at[col, row].add(norm)
    return a_hat


class ArmaConvModulePallas:
    """Mirror of ArmaConvModule (ARMAConv + optional BatchNorm1d + activation)."""

    def __init__(self, num_channels_in, num_channels_out, activation,
                 num_internal_layers, num_internal_stacks, batch_norm=False,
                 shared_weights=True, dropout=0.25, key=None):
        self.num_in = num_channels_in
        self.num_out = num_channels_out
        self.activation = activation
        self.num_internal_layers = num_internal_layers   # T
        self.num_stacks = num_internal_stacks            # K
        self.batch_norm = batch_norm
        self.shared_weights = shared_weights
        self.dropout = dropout  # TODO(synk): train-mode dropout on the root term
                                # not implemented (identity in eval forward).

        key = jax.random.PRNGKey(0) if key is None else key
        k1, k2, k3 = jax.random.split(key, 3)
        K, T, F_in, F_out = (num_internal_stacks, num_internal_layers,
                             num_channels_in, num_channels_out)
        T_w = 1 if shared_weights else T
        self.init_weight = _glorot(k1, (K, F_in, F_out))
        self.weight = _glorot(k2, (max(1, T_w - 1), K, F_out, F_out))
        self.root_weight = _glorot(k3, (T_w, K, F_in, F_out))
        self.bias = jnp.zeros((T_w, K, 1, F_out), jnp.float32)

        if batch_norm:
            # TODO(synk): eval-mode BatchNorm1d only (running stats); train-mode
            # batch statistics are not implemented.
            self.bn_mean = jnp.zeros((F_out,), jnp.float32)
            self.bn_var = jnp.ones((F_out,), jnp.float32)
            self.bn_gamma = jnp.ones((F_out,), jnp.float32)
            self.bn_beta = jnp.zeros((F_out,), jnp.float32)

    def __call__(self, a_hat_pad_bf16, x):
        n = x.shape[0]
        K, T, F_out = self.num_stacks, self.num_internal_layers, self.num_out
        shared = self.shared_weights

        x0 = x.astype(jnp.float32)
        out = jnp.broadcast_to(x0[None], (K, n, x0.shape[1]))  # [K, N, F_in]

        for t in range(T):
            # ---- hoisted projections (done once per step, outside the k loop) ----
            if t == 0:
                h = jnp.einsum("knf,kfo->kno", out, self.init_weight)
            else:
                w = self.weight[0 if shared else t - 1]
                h = jnp.einsum("knf,kfo->kno", out, w)
            r_idx = 0 if shared else t
            root = (jnp.einsum("nf,kfo->kno", x0, self.root_weight[r_idx])
                    + self.bias[r_idx])                         # [K, N, F_out]

            # ---- pack K stacks along the feature/lane axis -> lane-dense ----
            h2 = jnp.transpose(h, (1, 0, 2)).reshape(n, K * F_out)
            r2 = jnp.transpose(root, (1, 0, 2)).reshape(n, K * F_out)

            apply_relu = (t < T - 1)   # ARMAConv internal act = ReLU
            o2 = arma_aggregate_pallas(a_hat_pad_bf16, h2, r2, apply_relu)

            out = jnp.transpose(o2.reshape(n, K, F_out), (1, 0, 2))

        y = out.mean(axis=0)                                    # [N, F_out]
        if self.batch_norm:
            y = ((y - self.bn_mean) * jax.lax.rsqrt(self.bn_var + 1e-5)
                 * self.bn_gamma + self.bn_beta)
        return _apply_activation(y, self.activation)


class ArmaNetRayPallas:
    """Mirror of ArmaNet_ray."""

    def __init__(self, num_layers, num_channels, activation,
                 num_internal_layers, num_internal_stacks, batch_norm_index,
                 shared_weights, dropout, final_linear_layer,
                 final_sigmoid_layer=True, key=None):
        key = jax.random.PRNGKey(0) if key is None else key
        keys = jax.random.split(key, num_layers + 1)
        self.final_linear_layer = final_linear_layer
        self.final_sigmoid_layer = final_sigmoid_layer
        self.convs = []
        for i in range(num_layers):
            self.convs.append(ArmaConvModulePallas(
                num_channels_in=num_channels[i],
                num_channels_out=num_channels[i + 1],
                activation=activation[i],
                num_internal_layers=num_internal_layers[i],
                num_internal_stacks=num_internal_stacks[i],
                batch_norm=batch_norm_index[i],
                shared_weights=shared_weights,
                dropout=dropout,
                key=keys[i]))
        if final_linear_layer:
            kw, kb = jax.random.split(keys[-1])
            # nn.Linear(1, 1): weight/bias ~ U(-1, 1)
            self.lin_w = jax.random.uniform(kw, (1, 1), jnp.float32, -1.0, 1.0)
            self.lin_b = jax.random.uniform(kb, (1,), jnp.float32, -1.0, 1.0)

    def __call__(self, edge_index, edge_attr, x):
        n = x.shape[0]
        # Build the dense normalized adjacency once, reuse for all layers/steps.
        a_hat = gcn_norm_dense(edge_index, edge_attr, n)
        n_pad = _pad_dim(n)
        a_pad = jnp.zeros((n_pad, n_pad), jnp.bfloat16).at[:n, :n].set(
            a_hat.astype(jnp.bfloat16))

        h = x.astype(jnp.float32)
        for conv in self.convs:
            h = conv(a_pad, h)
        if self.final_linear_layer:
            h = h @ self.lin_w.T + self.lin_b
        if self.final_sigmoid_layer:
            h = jax.nn.sigmoid(h)
        return h


# --------------------------- pure-JAX reference ------------------------------

def arma_net_reference(net, edge_index, edge_attr, x):
    """Pure f32 jnp reference (no Pallas, no bf16, no padding)."""
    n = x.shape[0]
    a_hat = gcn_norm_dense(edge_index, edge_attr, n)
    h = x.astype(jnp.float32)
    for conv in net.convs:
        K, T = conv.num_stacks, conv.num_internal_layers
        shared = conv.shared_weights
        x0 = h
        out = jnp.broadcast_to(h[None], (K, n, h.shape[1]))
        for t in range(T):
            if t == 0:
                hh = jnp.einsum("knf,kfo->kno", out, conv.init_weight)
            else:
                hh = jnp.einsum("knf,kfo->kno", out,
                                conv.weight[0 if shared else t - 1])
            agg = jnp.einsum("nm,kmo->kno", a_hat, hh)
            r_idx = 0 if shared else t
            out = (agg + jnp.einsum("nf,kfo->kno", x0, conv.root_weight[r_idx])
                   + conv.bias[r_idx])
            if t < T - 1:
                out = jnp.maximum(out, 0.0)
        y = out.mean(axis=0)
        if conv.batch_norm:
            y = ((y - conv.bn_mean) * jax.lax.rsqrt(conv.bn_var + 1e-5)
                 * conv.bn_gamma + conv.bn_beta)
        h = _apply_activation(y, conv.activation)
    if net.final_linear_layer:
        h = h @ net.lin_w.T + net.lin_b
    if net.final_sigmoid_layer:
        h = jax.nn.sigmoid(h)
    return h


# --------------------------------- demo ---------------------------------------

if __name__ == "__main__":
    key = jax.random.PRNGKey(0)
    k_x, k_src, k_dst, k_w, k_param = jax.random.split(key, 5)

    N, C_IN, E = 16, 4, 40
    num_channels = [C_IN, 16, 1]          # last channel = 1 for Linear(1,1)

    x = jax.random.normal(k_x, (N, C_IN), jnp.float32)
    src = jax.random.randint(k_src, (E,), 0, N, dtype=jnp.int32)
    dst = jax.random.randint(k_dst, (E,), 0, N, dtype=jnp.int32)
    edge_index = jnp.stack([src, dst])                            # [2, E]
    edge_attr = jax.random.uniform(k_w, (E,), jnp.float32) + 0.1  # [E]

    net = ArmaNetRayPallas(
        num_layers=2,
        num_channels=num_channels,
        activation=["relu", None],
        num_internal_layers=[2, 2],
        num_internal_stacks=[2, 2],
        batch_norm_index=[False, False],
        shared_weights=True,
        dropout=0.25,
        final_linear_layer=True,
        final_sigmoid_layer=True,
        key=k_param)

    out = net(edge_index, edge_attr, x)
    jax.block_until_ready(out)

    ref = arma_net_reference(net, edge_index, edge_attr, x)
    assert out.shape == (N, 1), out.shape
    max_err = float(jnp.max(jnp.abs(out - ref)))
    assert jnp.allclose(out, ref, atol=3e-2, rtol=3e-2), (
        f"mismatch vs reference (max abs err {max_err})")

    print("KERNEL_OK")
</pallas_src>

<mosaic_0001>
module attributes {stable_mosaic.version = 11 : i64} {
  func.func @_arma_agg_kernel(%arg0: i32, %arg1: i32, %arg2: i32, %arg3: memref<128x128xbf16, #tpu.memory_space<vmem>>, %arg4: memref<128x128xbf16, #tpu.memory_space<vmem>>, %arg5: memref<128x128xf32, #tpu.memory_space<vmem>>, %arg6: memref<128x128xf32, #tpu.memory_space<vmem>>, %arg7: memref<128x128xf32, #tpu.memory_space<vmem>>) attributes {dimension_semantics = [#tpu.dimension_semantics<parallel>, #tpu.dimension_semantics<parallel>, #tpu.dimension_semantics<arbitrary>], iteration_bounds = array<i64: 1, 1, 1>, scalar_prefetch = 0 : i64, scratch_operands = 1 : i64, tpu.core_type = #tpu.core_type<tc>, window_params = [{transform_indices = @transform_0, window_bounds = array<i64: 128, 128>}, {transform_indices = @transform_1, window_bounds = array<i64: 128, 128>}, {transform_indices = @transform_2, window_bounds = array<i64: 128, 128>}, {transform_indices = @transform_3, window_bounds = array<i64: 128, 128>}]} {
    %c0_i32 = arith.constant 0 : i32
    %0 = arith.cmpi eq, %arg2, %c0_i32 : i32
    %1 = arith.extui %0 : i1 to i32
    %c0_i32_0 = arith.constant 0 : i32
    %2 = arith.cmpi ne, %1, %c0_i32_0 : i32
    scf.if %2 {
      %cst_10 = arith.constant 0.000000e+00 : f32
      %12 = vector.broadcast %cst_10 : f32 to vector<128x128xf32>
      %c0_11 = arith.constant 0 : index
      %c0_12 = arith.constant 0 : index
      %13 = vector.load %arg7[%c0_11, %c0_12] : memref<128x128xf32, #tpu.memory_space<vmem>>, vector<128x128xf32>
      tpu.vector_store %arg7[%c0_11, %c0_12], %12 {strides = array<i32>} : memref<128x128xf32, #tpu.memory_space<vmem>>, vector<128x128xf32>,
    } else {
    }
    %c0 = arith.constant 0 : index
    %c0_1 = arith.constant 0 : index
    %3 = vector.load %arg7[%c0, %c0_1] : memref<128x128xf32, #tpu.memory_space<vmem>>, vector<128x128xf32>
    %c0_2 = arith.constant 0 : index
    %c0_3 = arith.constant 0 : index
    %4 = vector.load %arg3[%c0_2, %c0_3] : memref<128x128xbf16, #tpu.memory_space<vmem>>, vector<128x128xbf16>
    %c0_4 = arith.constant 0 : index
    %c0_5 = arith.constant 0 : index
    %5 = vector.load %arg4[%c0_4, %c0_5] : memref<128x128xbf16, #tpu.memory_space<vmem>>, vector<128x128xbf16>
    %cst = arith.constant dense<0.000000e+00> : vector<128x128xf32>
    %6 = tpu.matmul %4, %5, %cst {dimension_numbers = #tpu.dot_dimension_numbers<[1], [0], [0], [1], [0, 0, 1, 1], [], []>} : vector<128x128xbf16>, vector<128x128xbf16>, vector<128x128xf32> -> vector<128x128xf32>
    %7 = arith.addf %3, %6 : vector<128x128xf32>
    %c0_6 = arith.constant 0 : index
    %c0_7 = arith.constant 0 : index
    %8 = vector.load %arg7[%c0_6, %c0_7] : memref<128x128xf32, #tpu.memory_space<vmem>>, vector<128x128xf32>
    tpu.vector_store %arg7[%c0_6, %c0_7], %7 {strides = array<i32>} : memref<128x128xf32, #tpu.memory_space<vmem>>, vector<128x128xf32>,
    %c0_i32_8 = arith.constant 0 : i32
    %9 = arith.cmpi eq, %arg2, %c0_i32_8 : i32
    %10 = arith.extui %9 : i1 to i32
    %c0_i32_9 = arith.constant 0 : i32
    %11 = arith.cmpi ne, %10, %c0_i32_9 : i32
    scf.if %11 {
      %c0_10 = arith.constant 0 : index
      %c0_11 = arith.constant 0 : index
      %12 = vector.load %arg7[%c0_10, %c0_11] : memref<128x128xf32, #tpu.memory_space<vmem>>, vector<128x128xf32>
      %c0_12 = arith.constant 0 : index
      %c0_13 = arith.constant 0 : index
      %13 = vector.load %arg5[%c0_12, %c0_13] : memref<128x128xf32, #tpu.memory_space<vmem>>, vector<128x128xf32>
      %14 = arith.addf %12, %13 : vector<128x128xf32>
      %cst_14 = arith.constant 0.000000e+00 : f32
      %15 = vector.broadcast %cst_14 : f32 to vector<128x128xf32>
      %16 = arith.maximumf %14, %15 : vector<128x128xf32>
      %c0_15 = arith.constant 0 : index
      %c0_16 = arith.constant 0 : index
      %17 = vector.load %arg6[%c0_15, %c0_16] : memref<128x128xf32, #tpu.memory_space<vmem>>, vector<128x128xf32>
      tpu.vector_store %arg6[%c0_15, %c0_16], %16 {strides = array<i32>} : memref<128x128xf32, #tpu.memory_space<vmem>>, vector<128x128xf32>,
    } else {
    }
    return
  }
  func.func @transform_0(%arg0: i32, %arg1: i32, %arg2: i32) -> (i32, i32) {
    %c0_i32 = arith.constant 0 : i32
    return %arg0, %arg2 : i32, i32
  }
  func.func @transform_1(%arg0: i32, %arg1: i32, %arg2: i32) -> (i32, i32) {
    %c0_i32 = arith.constant 0 : i32
    return %arg2, %arg1 : i32, i32
  }
  func.func @transform_2(%arg0: i32, %arg1: i32, %arg2: i32) -> (i32, i32) {
    %c0_i32 = arith.constant 0 : i32
    return %arg0, %arg1 : i32, i32
  }
  func.func @transform_3(%arg0: i32, %arg1: i32, %arg2: i32) -> (i32, i32) {
    %c0_i32 = arith.constant 0 : i32
    return %arg0, %arg1 : i32, i32
  }
}

</mosaic_0001>

<bundles_post_ra>
// kernel: tpu_custom_call.1
= control target key start
LH: loop header
LB: loop body
LE: loop exit
PB: predicated region body
PF: predicated region fallthrough
CT: control target
= control target key end

     0   :  { %8 = vsyncpa [#allocation4], 0  ;;  %s738_s0 = inlined_call_operand.hbm [shape: bf16[128,128], index: 0, kind: input, shape index: {}]   ;;  %s739_s1 = inlined_call_operand.hbm [shape: bf16[128,128], index: 1, kind: input, shape index: {}]   ;;  %s740_s2 = inlined_call_operand.hbm [shape: f32[128,128], index: 2, kind: input, shape index: {}]   ;;  %s741_s3 = inlined_call_operand.hbm [shape: f32[128,128], index: 3, kind: output, shape index: {}]  }
   0x1   :  { %9 = vsyncpa [#allocation7], 0 }
   0x2   :  { %10 = vsyncpa [#allocation5], 0  ;;  %s649_s12 = smov [#allocation6]   ;;  %s650_s14 = smov [#allocation3]  }
   0x3   :  { %s28_s13 = sshll.u32 %s649_s12, 4  ;;  %s16_s15 = sshll.u32 %s650_s14, 4  ;;  %s29_s13 = int_to_ptr.vmem [resolvable:$true] %s28_s13  ;;  %s677_s15 = int_to_ptr.vmem [resolvable:$true] %s16_s15 }
   0x4   :  { %s555_s18 = scalar_lea.hbm %s739_s1, 1024 }
   0x5   :  { %p556_p0 = scmp.ne.s32.totalorder %s739_s1, %s555_s18  ;;  %p559_p1 = scmp.lt.u32.totalorder %s555_s18, %s739_s1 }
   0x7   :  { %p561_p2 = pnand %p559_p1, %p556_p0 }
   0x9   :  { %564 = shalt.err (!%p561_p2)
}
   0xa   :  { %s565_s23 = scalar_lea.vmem %s29_s13, 1024  ;;  %p570_p4 = scmp.lt.s32.totalorder %s29_s13, %s29_s13 }
   0xb   :  { %p566_p3 = scmp.ne.s32.totalorder %s29_s13, %s565_s23  ;;  %p571_p5 = scmp.lt.s32.totalorder %s565_s23, %s565_s23 }
   0xd   :  { %p572_p6 = por %p571_p5, %p570_p4 }
   0xf   :  { %p573_p7 = pnand %p572_p6, %p566_p3 }
  0x11   :  { %576 = shalt.err (!%p573_p7)
}
  0x12   :  { %s651_s24 = smov 64   ;;  %s652_s25 = smov 4  }
  0x13   :  { %34 = dma.hbm_to_vmem [thread:$0]  %s739_s1, 1024, %s29_s13, [#allocation7], %s651_s24, %s651_s24, %s652_s25  }
  0x14   :  { %s577_s30 = scalar_lea.hbm %s738_s0, 1024 }
  0x15   :  { %p578_p8 = scmp.ne.s32.totalorder %s738_s0, %s577_s30  ;;  %p581_p9 = scmp.lt.u32.totalorder %s577_s30, %s738_s0 }
  0x17   :  { %p583_p10 = pnand %p581_p9, %p578_p8 }
  0x19   :  { %586 = shalt.err (!%p583_p10)
}
  0x1a   :  { %s587_s8 = scalar_lea.vmem %s677_s15, 1024  ;;  %p592_p12 = scmp.lt.s32.totalorder %s677_s15, %s677_s15 }
  0x1b   :  { %p588_p11 = scmp.ne.s32.totalorder %s677_s15, %s587_s8  ;;  %p593_p13 = scmp.lt.s32.totalorder %s587_s8, %s587_s8 }
  0x1d   :  { %p594_p0 = por %p593_p13, %p592_p12 }
  0x1f   :  { %p595_p1 = pnand %p594_p0, %p588_p11 }
  0x21   :  { %598 = shalt.err (!%p595_p1)
}
  0x22   :  { %22 = dma.hbm_to_vmem [thread:$0]  %s738_s0, 1024, %s677_s15, [#allocation4], %s651_s24, %s651_s24, %s652_s25  }
  0x23   :  { %s653_s10 = smov [#allocation8]   ;;  %s599_s14 = scalar_lea.hbm %s740_s2, 2048 }
  0x24   :  { %s40_s11 = sshll.u32 %s653_s10, 4  ;;  %p600_p2 = scmp.ne.s32.totalorder %s740_s2, %s599_s14  ;;  %s41_s11 = int_to_ptr.vmem [resolvable:$true] %s40_s11 }
  0x25   :  { %p603_p3 = scmp.lt.u32.totalorder %s599_s14, %s740_s2 }
  0x27   :  { %p605_p4 = pnand %p603_p3, %p600_p2 }
  0x29   :  { %608 = shalt.err (!%p605_p4)
}
  0x2a   :  { %s609_s20 = scalar_lea.vmem %s41_s11, 2048  ;;  %p614_p6 = scmp.lt.s32.totalorder %s41_s11, %s41_s11 }
  0x2b   :  { %p610_p5 = scmp.ne.s32.totalorder %s41_s11, %s609_s20  ;;  %p615_p7 = scmp.lt.s32.totalorder %s609_s20, %s609_s20 }
  0x2d   :  { %p616_p8 = por %p615_p7, %p614_p6 }
  0x2f   :  { %p617_p9 = pnand %p616_p8, %p610_p5 }
  0x31   :  { %620 = shalt.err (!%p617_p9)
}
  0x32   :  { %s654_s0 = smov 128   ;;  %s655_s15 = smov 8  }
  0x33   :  { %46 = dma.hbm_to_vmem [thread:$0]  %s740_s2, 2048, %s41_s11, [#allocation7], %s654_s0, %s654_s0, %s655_s15  }
  0x34   :  { %643 = dma.done.wait [#allocation4], 1024  }
  0x35   :  { %644 = vsyncadd [#allocation4], 4294966272 }
  0x36   :  { %645 = dma.done.wait [#allocation7], 3072  }
  0x37   :  { %646 = vsyncadd [#allocation7], 4294964224  ;;  %v539_v0 = vld [vmem:[#allocation6] sm:$0xff]   ;;  %v540_v1 = vld [vmem:[#allocation6 + $0x8] sm:$0xff]   ;;  %s656_s2 = smov [#allocation9]  }
  0x38   :  { %483 = vmatprep.subr.bf16.mxu0 %v539_v0  ;;  %515 = vmatprep.subr.bf16.mxu1 %v539_v0  ;;  %v541_v2 = vld [vmem:[#allocation6 + $0x10] sm:$0xff]   ;;  %v542_v3 = vld [vmem:[#allocation6 + $0x18] sm:$0xff]   ;;  %v547_v4 = vld [vmem:[#allocation3] sm:$0xff]   ;;  %s438_s23 = sshll.u32 %s656_s2, 4  ;;  %s439_s23 = int_to_ptr.vmem [resolvable:$true] %s438_s23 }
  0x39   :  { %484 = vmatpush3.bf16.msra.mxu0 %v539_v0  ;;  %523 = vmatpush3.bf16.msra.mxu1 %v539_v0  ;;  %v548_v5 = vld [vmem:[#allocation3 + $0x20] sm:$0xff]   ;;  %v544_v7 = vld [vmem:[#allocation6 + $0x28] sm:$0xff]   ;;  %v545_v8 = vld [vmem:[#allocation6 + $0x30] sm:$0xff]   ;;  %s621_s24 = scalar_lea.vmem %s439_s23, 2048  ;;  %p626_p11 = scmp.lt.s32.totalorder %s439_s23, %s439_s23 }
  0x3a   :  { %485 = vmatprep.subr.bf16.mxu0 %v540_v1  ;;  %516 = vmatprep.subr.bf16.mxu1 %v540_v1  ;;  %v543_v6 = vld [vmem:[#allocation6 + $0x20] sm:$0xff]   ;;  %v546_v9 = vld [vmem:[#allocation6 + $0x38] sm:$0xff]   ;;  %v549_v10 = vld [vmem:[#allocation3 + $0x8] sm:$0xff]   ;;  %p622_p10 = scmp.ne.s32.totalorder %s439_s23, %s621_s24  ;;  %p627_p12 = scmp.lt.s32.totalorder %s621_s24, %s621_s24 }
  0x3b   :  { %499 = vmatprep.mubr.bf16.mxu0 %v547_v4  ;;  %507 = vmatprep.mubr.bf16.mxu1 %v548_v5  ;;  %v550_v11 = vld [vmem:[#allocation3 + $0x28] sm:$0xff]   ;;  %v551_v12 = vld [vmem:[#allocation3 + $0x10] sm:$0xff]   ;;  %v553_v14 = vld [vmem:[#allocation3 + $0x18] sm:$0xff]  }
  0x3c   :  { %v552_v13 = vld [vmem:[#allocation3 + $0x30] sm:$0xff]   ;;  %v554_v15 = vld [vmem:[#allocation3 + $0x38] sm:$0xff]   ;;  %v369_v18 = vld [vmem:[#allocation8] sm:$0xff]  ;;  %p628_p13 = por %p627_p12, %p626_p11 }
  0x3d   :  { %486 = vmatpush3.bf16.msra.mxu0 %v540_v1  ;;  %524 = vmatpush3.bf16.msra.mxu1 %v540_v1  ;;  %v371_v16 = vld [vmem:[#allocation8 + $0x10] sm:$0xff]  ;;  %v377_v19 = vld [vmem:[#allocation8 + $0x40] sm:$0xff]  ;;  %v372_v22 = vld [vmem:[#allocation8 + $0x18] sm:$0xff] }
  0x3e   :  { %487 = vmatprep.subr.bf16.mxu0 %v541_v2  ;;  %517 = vmatprep.subr.bf16.mxu1 %v541_v2  ;;  %v379_v17 = vld [vmem:[#allocation8 + $0x50] sm:$0xff]  ;;  %v380_v23 = vld [vmem:[#allocation8 + $0x58] sm:$0xff]  ;;  %v370_v28 = vld [vmem:[#allocation8 + $0x8] sm:$0xff]  ;;  %p629_p0 = pnand %p628_p13, %p622_p10 }
  0x3f   :  { %v378_v29 = vld [vmem:[#allocation8 + $0x48] sm:$0xff]  ;;  %v375_v48 = vld [vmem:[#allocation8 + $0x30] sm:$0xff]  ;;  %v373_v50 = vld [vmem:[#allocation8 + $0x20] sm:$0xff] }
  0x40   :  { %v383_v49 = vld [vmem:[#allocation8 + $0x70] sm:$0xff]  ;;  %v381_v51 = vld [vmem:[#allocation8 + $0x60] sm:$0xff]  ;;  %v376_v54 = vld [vmem:[#allocation8 + $0x38] sm:$0xff] }
  0x41   :  { %488 = vmatpush3.bf16.msra.mxu0 %v541_v2  ;;  %525 = vmatpush3.bf16.msra.mxu1 %v541_v2  ;;  %v384_v55 = vld [vmem:[#allocation8 + $0x78] sm:$0xff]  ;;  %v374_v60 = vld [vmem:[#allocation8 + $0x28] sm:$0xff] }
  0x42   :  { %489 = vmatprep.subr.bf16.mxu0 %v542_v3  ;;  %518 = vmatprep.subr.bf16.mxu1 %v542_v3  ;;  %v382_v61 = vld [vmem:[#allocation8 + $0x68] sm:$0xff] }
  0x45   :  { %490 = vmatpush3.bf16.msra.mxu0 %v542_v3  ;;  %526 = vmatpush3.bf16.msra.mxu1 %v542_v3 }
  0x46   :  { %491 = vmatprep.subr.bf16.mxu0 %v543_v6  ;;  %519 = vmatprep.subr.bf16.mxu1 %v543_v6 }
  0x49   :  { %492 = vmatpush3.bf16.msra.mxu0 %v543_v6  ;;  %527 = vmatpush3.bf16.msra.mxu1 %v543_v6 }
  0x4a   :  { %493 = vmatprep.subr.bf16.mxu0 %v544_v7  ;;  %520 = vmatprep.subr.bf16.mxu1 %v544_v7 }
  0x4d   :  { %494 = vmatpush3.bf16.msra.mxu0 %v544_v7  ;;  %528 = vmatpush3.bf16.msra.mxu1 %v544_v7 }
  0x4e   :  { %495 = vmatprep.subr.bf16.mxu0 %v545_v8  ;;  %521 = vmatprep.subr.bf16.mxu1 %v545_v8 }
  0x51   :  { %496 = vmatpush3.bf16.msra.mxu0 %v545_v8  ;;  %529 = vmatpush3.bf16.msra.mxu1 %v545_v8 }
  0x52   :  { %497 = vmatprep.subr.bf16.mxu0 %v546_v9  ;;  %522 = vmatprep.subr.bf16.mxu1 %v546_v9 }
  0x55   :  { %498 = vmatpush3.bf16.msra.mxu0 %v546_v9  ;;  %530 = vmatpush3.bf16.msra.mxu1 %v546_v9 }
  0x58   :  { %500 = vmatmul.mubr.bf16.vlgmr.msra.gmra.mrb[0].mxu0 %v549_v10  ;;  %508 = vmatmul.mubr.bf16.vlgmr.msra.gmra.mrb[0].mxu1 %v550_v11 }
  0x59   :  { %503 = vmatprep.mubr.bf16.mxu0 %v551_v12  ;;  %511 = vmatprep.mubr.bf16.mxu1 %v552_v13 }
  0x60   :  { %504 = vmatmul.mubr.bf16.gmra.mrb[4].mxu0 %v553_v14  ;;  %512 = vmatmul.mubr.bf16.gmra.mrb[4].mxu1 %v554_v15 }
 0x12b   :  { %v501_v20 = vpop.f32.mrb[0].mxu0  ;;  %v509_v21 = vpop.f32.mrb[0].mxu1 }
 0x12c   :  { %v387_v24 = vadd.f32 %v501_v20, %v371_v16  ;;  %v395_v25 = vadd.f32 %v509_v21, %v379_v17  ;;  %v255_v26 = vpop.f32.mrb[1].mxu0  ;;  %v287_v27 = vpop.f32.mrb[1].mxu1 }
 0x12d   :  { %v385_v30 = vadd.f32 %v369_v18, %v255_v26  ;;  %v393_v31 = vadd.f32 %v377_v19, %v287_v27  ;;  %v502_v32 = vpop.f32.mrb[2].mxu0  ;;  %v510_v33 = vpop.f32.mrb[2].mxu1 }
 0x12e   :  { %v403_v34 = vmax.f32 %v387_v24, 0.0  ;;  %v411_v35 = vmax.f32 %v395_v25, 0.0  ;;  %v388_v36 = vadd.f32 %v502_v32, %v372_v22  ;;  %v396_v37 = vadd.f32 %v510_v33, %v380_v23  ;;  %v258_v38 = vpop.f32.mrb[3].mxu0  ;;  %v290_v39 = vpop.f32.mrb[3].mxu1 }
 0x12f   :  { %v401_v40 = vmax.f32 %v385_v30, 0.0  ;;  %v409_v41 = vmax.f32 %v393_v31, 0.0  ;;  %v386_v42 = vadd.f32 %v370_v28, %v258_v38  ;;  %v394_v43 = vadd.f32 %v378_v29, %v290_v39 }
 0x130   :  { %419 = vst [vmem:[#allocation9 + $0x10] sm:$0xff] %v403_v34  ;;  %427 = vst [vmem:[#allocation9 + $0x50] sm:$0xff] %v411_v35  ;;  %v404_v44 = vmax.f32 %v388_v36, 0.0  ;;  %v412_v45 = vmax.f32 %v396_v37, 0.0 }
 0x131   :  { %417 = vst [vmem:[#allocation9] sm:$0xff] %v401_v40  ;;  %425 = vst [vmem:[#allocation9 + $0x40] sm:$0xff] %v409_v41  ;;  %v402_v46 = vmax.f32 %v386_v42, 0.0  ;;  %v410_v47 = vmax.f32 %v394_v43, 0.0 }
 0x132   :  { %420 = vst [vmem:[#allocation9 + $0x18] sm:$0xff] %v404_v44  ;;  %428 = vst [vmem:[#allocation9 + $0x58] sm:$0xff] %v412_v45 }
 0x133   :  { %418 = vst [vmem:[#allocation9 + $0x8] sm:$0xff] %v402_v46  ;;  %426 = vst [vmem:[#allocation9 + $0x48] sm:$0xff] %v410_v47  ;;  %v505_v52 = vpop.f32.mrb[4].mxu0  ;;  %v513_v53 = vpop.f32.mrb[4].mxu1 }
 0x134   :  { %v391_v56 = vadd.f32 %v505_v52, %v375_v48  ;;  %v399_v57 = vadd.f32 %v513_v53, %v383_v49  ;;  %v271_v58 = vpop.f32.mrb[5].mxu0  ;;  %v303_v59 = vpop.f32.mrb[5].mxu1 }
 0x135   :  { %v389_v62 = vadd.f32 %v373_v50, %v271_v58  ;;  %v397_v63 = vadd.f32 %v381_v51, %v303_v59  ;;  %v506_v0 = vpop.f32.mrb[6].mxu0  ;;  %v514_v1 = vpop.f32.mrb[6].mxu1 }
 0x136   :  { %v407_v2 = vmax.f32 %v391_v56, 0.0  ;;  %v415_v3 = vmax.f32 %v399_v57, 0.0  ;;  %v392_v4 = vadd.f32 %v506_v0, %v376_v54  ;;  %v400_v5 = vadd.f32 %v514_v1, %v384_v55  ;;  %v274_v6 = vpop.f32.mrb[7].mxu0  ;;  %v306_v7 = vpop.f32.mrb[7].mxu1 }
 0x137   :  { %v405_v8 = vmax.f32 %v389_v62, 0.0  ;;  %v413_v9 = vmax.f32 %v397_v63, 0.0  ;;  %v390_v10 = vadd.f32 %v374_v60, %v274_v6  ;;  %v398_v11 = vadd.f32 %v382_v61, %v306_v7 }
 0x138   :  { %423 = vst [vmem:[#allocation9 + $0x30] sm:$0xff] %v407_v2  ;;  %431 = vst [vmem:[#allocation9 + $0x70] sm:$0xff] %v415_v3  ;;  %v408_v12 = vmax.f32 %v392_v4, 0.0  ;;  %v416_v13 = vmax.f32 %v400_v5, 0.0 }
 0x139   :  { %421 = vst [vmem:[#allocation9 + $0x20] sm:$0xff] %v405_v8  ;;  %429 = vst [vmem:[#allocation9 + $0x60] sm:$0xff] %v413_v9  ;;  %v406_v14 = vmax.f32 %v390_v10, 0.0  ;;  %v414_v15 = vmax.f32 %v398_v11, 0.0 }
 0x13a   :  { %424 = vst [vmem:[#allocation9 + $0x38] sm:$0xff] %v408_v12  ;;  %432 = vst [vmem:[#allocation9 + $0x78] sm:$0xff] %v416_v13 }
 0x13b   :  { %422 = vst [vmem:[#allocation9 + $0x28] sm:$0xff] %v406_v14  ;;  %430 = vst [vmem:[#allocation9 + $0x68] sm:$0xff] %v414_v15 }
 0x13c   :  { %632 = shalt.err (!%p629_p0)
}
 0x13d   :  { %s633_s27 = scalar_lea.hbm %s741_s3, 2048 }
 0x13e   :  { %p634_p1 = scmp.ne.s32.totalorder %s741_s3, %s633_s27  ;;  %p637_p2 = scmp.lt.u32.totalorder %s633_s27, %s741_s3 }
 0x140   :  { %p639_p3 = pnand %p637_p2, %p634_p1 }
 0x142   :  { %642 = shalt.err (!%p639_p3)
}
 0x143   :  { %444 = dma.vmem_to_hbm [thread:$0]  %s439_s23, 2048, %s741_s3, [#allocation5], %s654_s0, %s654_s0, %s655_s15  }
 0x144   :  { %647 = dma.done.wait [#allocation5], 2048  }
 0x145   :  { %648 = vsyncadd [#allocation5], 4294965248 }
 0x146   :  { %448 = vsyncpa [#allocation4], 1 }
 0x147   :  { %449 = vsyncpa [#allocation7], 1 }
 0x148   :  { %450 = vsyncpa [#allocation5], 1 }

</bundles_post_ra>
